<compile_context>
chip_gen: v5e
topology: v5e:2x2
jax: 0.10.0
libtpu: 0.0.40
codegen_flags: <defaults>
</compile_context>

<pallas_src>
import jax
import jax.numpy as jnp
from jax import lax
from jax.experimental import pallas as pl
from jax.experimental.pallas import tpu as pltpu


def _round_up(v, mult):
    return ((v + mult - 1) // mult) * mult


def _two_layer_kernel(x_ref, w1t_ref, w2t_ref, o_ref):
    """One M-tile of: out = sigmoid(x @ W1^T) @ W2^T  (bias=False).

    x_ref  : (tm, K)   activations
    w1t_ref: (K, H)    linear1 weight, pre-transposed in the wrapper
    w2t_ref: (H, O)    linear2 weight, pre-transposed (unpadded output width)
    o_ref  : (tm, O)
    """
    # Optional compute-dtype cast happens here (VMEM-only, VPU has slack);
    # it is a no-op when x already matches the weight dtype.
    x = x_ref[...].astype(w1t_ref.dtype)
    h = jnp.dot(x, w1t_ref[...],
                preferred_element_type=jnp.float32,
                precision=lax.Precision.HIGHEST)
    # sigmoid kept in f32 (safe on v5e which has no bf16 VPU/EUP).
    h = jax.nn.sigmoid(h)
    out = jnp.dot(h.astype(w2t_ref.dtype), w2t_ref[...],
                  preferred_element_type=jnp.float32,
                  precision=lax.Precision.HIGHEST)
    o_ref[...] = out.astype(o_ref.dtype)


def two_layer_flatten_forward(x, w1, w2, *, tile_m_cap=2048, compute_dtype=None):
    """Pallas forward for two_layer_flatten (activation='sigmoid', bias=False).

    x  : arbitrary shape, flattened to (-1, input_dim) like torch .view
    w1 : (hidden_dim, input_dim)   PyTorch nn.Linear layout
    w2 : (output_dim, hidden_dim)
    compute_dtype : optional MXU input dtype (e.g. jnp.bfloat16).  The cast is
                    done inside the kernel (no extra HBM traffic); accumulation
                    stays f32 and the output keeps x's dtype.
    """
    hidden_dim, input_dim = w1.shape
    output_dim = w2.shape[0]

    x2d = x.reshape(-1, input_dim)              # == torch .view(-1, input_dim)
    m = x2d.shape[0]
    out_dtype = x2d.dtype
    dt = compute_dtype if compute_dtype is not None else x2d.dtype

    # Pre-transpose (and optionally cast) the weights once; they are tiny and
    # stay VMEM-resident across the whole grid.  No output padding.
    w1t = w1.T.astype(dt)                       # (K, H)
    w2t = w2.T.astype(dt)                       # (H, O)

    out_itemsize = jnp.dtype(out_dtype).itemsize
    cost = pl.CostEstimate(
        flops=2 * m * (input_dim * hidden_dim + hidden_dim * output_dim),
        transcendentals=m * hidden_dim,
        bytes_accessed=(x2d.size * x2d.dtype.itemsize
                        + w1t.size * w1t.dtype.itemsize
                        + w2t.size * w2t.dtype.itemsize
                        + m * output_dim * out_itemsize),
    )

    # ---- small batch: single whole-array VMEM block, no grid -------------
    if m <= 512:
        return pl.pallas_call(
            _two_layer_kernel,
            out_shape=jax.ShapeDtypeStruct((m, output_dim), out_dtype),
            cost_estimate=cost,
        )(x2d, w1t, w2t)

    # ---- large batch: tiled "parallel" grid over rows ---------------------
    # Pad the row count to a multiple of 8 (sublane) so every block tiles
    # cleanly; padded rows are dropped afterwards.  (Never stage the whole
    # array as one VMEM block — that can exceed v7x's 64 MiB.)
    m_pad = _round_up(m, 8)
    if m_pad != m:
        x2d = jnp.pad(x2d, ((0, m_pad - m), (0, 0)))

    # Aim for >= ~8 grid steps (>= 4 per TensorCore on v7x) so the pipeline
    # overlaps DMA with compute; cap the tile for VMEM headroom (x tile at the
    # cap is 2 MB f32, ~5 MB total double-buffered footprint).
    tile_m = min(tile_m_cap, _round_up(max(256, m_pad // 8), 256))
    grid_m = pl.cdiv(m_pad, tile_m)

    out = pl.pallas_call(
        _two_layer_kernel,
        out_shape=jax.ShapeDtypeStruct((m_pad, output_dim), out_dtype),
        grid_spec=pltpu.PrefetchScalarGridSpec(
            num_scalar_prefetch=0,
            grid=(grid_m,),
            in_specs=[
                pl.BlockSpec((tile_m, input_dim), lambda i: (i, 0)),
                # Weights are grid-invariant: single VMEM buffer, no re-DMA.
                pl.BlockSpec((input_dim, hidden_dim), lambda i: (0, 0),
                             pipeline_mode=pl.Buffered(1)),
                pl.BlockSpec((hidden_dim, output_dim), lambda i: (0, 0),
                             pipeline_mode=pl.Buffered(1)),
            ],
            out_specs=pl.BlockSpec((tile_m, output_dim), lambda i: (i, 0)),
        ),
        compiler_params=pltpu.CompilerParams(
            dimension_semantics=("parallel",),    # megacore-shard the batch
            vmem_limit_bytes=32 * 1024 * 1024,    # safe on v5e/v6e/v7x (64 MiB)
        ),
        cost_estimate=cost,
    )(x2d, w1t, w2t)

    return out[:m] if m_pad != m else out


def _reference(x, w1, w2):
    x2d = x.reshape(-1, w1.shape[1])
    h = jax.nn.sigmoid(
        jnp.dot(x2d, w1.T, precision=lax.Precision.HIGHEST))
    return jnp.dot(h, w2.T, precision=lax.Precision.HIGHEST)


if __name__ == "__main__":
    # Shapes consistent with the module: NCHW input flattened so that
    # input_dim = C*H*W = 4*8*8 = 256, hidden_dim = 128, output_dim = 32.
    batch, C, H, W = 8, 4, 8, 8
    input_dim = C * H * W
    hidden_dim = 128
    output_dim = 32

    key = jax.random.PRNGKey(0)
    kx, k1, k2, kxl, kxi = jax.random.split(key, 5)

    x = jax.random.normal(kx, (batch, C, H, W), dtype=jnp.float32)
    bound1 = 1.0 / (input_dim ** 0.5)
    bound2 = 1.0 / (hidden_dim ** 0.5)
    w1 = jax.random.uniform(k1, (hidden_dim, input_dim), jnp.float32,
                            -bound1, bound1)
    w2 = jax.random.uniform(k2, (output_dim, hidden_dim), jnp.float32,
                            -bound2, bound2)

    # 1) small-batch path (single whole-array VMEM block, no grid).
    out = jax.block_until_ready(two_layer_flatten_forward(x, w1, w2))
    ref = _reference(x, w1, w2)
    assert out.shape == (batch, output_dim)
    assert jnp.allclose(out, ref, atol=2e-3, rtol=2e-3), "small-M mismatch"

    # 2) tiled 'parallel'-grid path (2048 rows -> tile_m=256, 8 grid steps).
    x_l = jax.random.normal(kxl, (2048, C, H, W), dtype=jnp.float32)
    out_l = jax.block_until_ready(two_layer_flatten_forward(x_l, w1, w2))
    ref_l = _reference(x_l, w1, w2)
    assert out_l.shape == (2048, output_dim)
    assert jnp.allclose(out_l, ref_l, atol=2e-3, rtol=2e-3), "large-M mismatch"

    # 3) irregular row count (row padding to a multiple of 8 + partial last
    #    grid block) — replaces the old whole-array fallback.
    x_i = jax.random.normal(kxi, (515, C, H, W), dtype=jnp.float32)
    out_i = jax.block_until_ready(two_layer_flatten_forward(x_i, w1, w2))
    ref_i = _reference(x_i, w1, w2)
    assert out_i.shape == (515, output_dim)
    assert jnp.allclose(out_i, ref_i, atol=2e-3, rtol=2e-3), "ragged-M mismatch"

    print("KERNEL_OK")
</pallas_src>

<mosaic_0001>
module attributes {stable_mosaic.version = 11 : i64} {
  func.func @_two_layer_kernel(%arg0: memref<8x256xf32, #tpu.memory_space<vmem>>, %arg1: memref<256x128xf32, #tpu.memory_space<vmem>>, %arg2: memref<128x32xf32, #tpu.memory_space<vmem>>, %arg3: memref<8x32xf32, #tpu.memory_space<vmem>>) attributes {dimension_semantics = [], scalar_prefetch = 0 : i64, scratch_operands = 0 : i64, tpu.core_type = #tpu.core_type<tc>} {
    %c0 = arith.constant 0 : index
    %c0_0 = arith.constant 0 : index
    %0 = vector.load %arg0[%c0, %c0_0] : memref<8x256xf32, #tpu.memory_space<vmem>>, vector<8x256xf32>
    %c0_1 = arith.constant 0 : index
    %c0_2 = arith.constant 0 : index
    %1 = vector.load %arg1[%c0_1, %c0_2] : memref<256x128xf32, #tpu.memory_space<vmem>>, vector<256x128xf32>
    %cst = arith.constant dense<0.000000e+00> : vector<8x128xf32>
    %2 = tpu.matmul %0, %1, %cst {dimension_numbers = #tpu.dot_dimension_numbers<[1], [0], [0], [1], [0, 0, 1, 1], [], []>, precision = #tpu.contract_precision<fp32>} : vector<8x256xf32>, vector<256x128xf32>, vector<8x128xf32> -> vector<8x128xf32>
    %3 = arith.negf %2 : vector<8x128xf32>
    %4 = math.exp %3 : vector<8x128xf32>
    %cst_3 = arith.constant 1.000000e+00 : f32
    %5 = vector.broadcast %cst_3 : f32 to vector<8x128xf32>
    %6 = arith.addf %5, %4 : vector<8x128xf32>
    %7 = arith.divf %5, %6 : vector<8x128xf32>
    %c0_4 = arith.constant 0 : index
    %c0_5 = arith.constant 0 : index
    %8 = vector.load %arg2[%c0_4, %c0_5] : memref<128x32xf32, #tpu.memory_space<vmem>>, vector<128x32xf32>
    %cst_6 = arith.constant dense<0.000000e+00> : vector<8x32xf32>
    %9 = tpu.matmul %7, %8, %cst_6 {dimension_numbers = #tpu.dot_dimension_numbers<[1], [0], [0], [1], [0, 0, 1, 1], [], []>, precision = #tpu.contract_precision<fp32>} : vector<8x128xf32>, vector<128x32xf32>, vector<8x32xf32> -> vector<8x32xf32>
    %c0_7 = arith.constant 0 : index
    %c0_8 = arith.constant 0 : index
    %10 = vector.load %arg3[%c0_7, %c0_8] : memref<8x32xf32, #tpu.memory_space<vmem>>, vector<8x32xf32>
    tpu.vector_store %arg3[%c0_7, %c0_8], %9 {strides = array<i32>} : memref<8x32xf32, #tpu.memory_space<vmem>>, vector<8x32xf32>,
    return
  }
}

</mosaic_0001>

<bundles_post_ra>
// kernel: tpu_custom_call.1
= control target key start
LH: loop header
LB: loop body
LE: loop exit
PB: predicated region body
PF: predicated region fallthrough
CT: control target
= control target key end

     0   :  { %8 = vsyncpa [#allocation3], 0  ;;  %s2020_s0 = inlined_call_operand.vmem [shape: f32[8,256], index: 0, kind: input, shape index: {}]   ;;  %s2021_s1 = inlined_call_operand.hbm [shape: f32[256,128], index: 1, kind: input, shape index: {}]   ;;  %s2022_s2 = inlined_call_operand.vmem [shape: f32[128,32], index: 2, kind: input, shape index: {}]   ;;  %s2023_s3 = inlined_call_operand.hbm [shape: f32[8,32], index: 3, kind: output, shape index: {}]  }
   0x1   :  { %9 = vsyncpa [#allocation4], 0  ;;  %s16_s14 = sshll.u32 %s2021_s1, 4  ;;  %s1203_s15 = smov [#allocation2]   ;;  %s17_s14 = int_to_ptr.hbm [resolvable:$true] %s16_s14 }
   0x2   :  { %s18_s16 = sshll.u32 %s1203_s15, 4  ;;  %s1204_s17 = smov 128   ;;  %s19_s16 = int_to_ptr.vmem [resolvable:$true] %s18_s16 }
   0x3   :  { %s1205_s18 = smov 8  }
   0x4   :  { %24 = dma.hbm_to_vmem [thread:$0]  %s17_s14, 4096, %s19_s16, [#allocation3], %s1204_s17, %s1204_s17, %s1205_s18  }
   0x5   :  { %1199 = dma.done.wait [#allocation3], 4096  }
   0x6   :  { %1200 = vsyncadd [#allocation3], 4294963200  ;;  %v48_v0 = vld [vmem:[#allocation2 + $0x78] sm:$0xff]  ;;  %v47_v1 = vld [vmem:[#allocation2 + $0x70] sm:$0xff]  ;;  %s1132_s27 = sshll.u32 %s2023_s3, 4  ;;  %vm1123_vm4 = vcmask 261120   ;;  %s1133_s27 = int_to_ptr.hbm [resolvable:$true] %s1132_s27 }
   0x7   :  { %v46_v2 = vld [vmem:[#allocation2 + $0x68] sm:$0xff]  ;;  %v1230_v3 = vand.u32 4294901760, %v48_v0  ;;  %v1232_v4 = vand.u32 4294901760, %v47_v1  ;;  %v45_v6 = vld [vmem:[#allocation2 + $0x60] sm:$0xff]  ;;  %v44_v7 = vld [vmem:[#allocation2 + $0x58] sm:$0xff] }
   0x8   :  { %v1234_v5 = vand.u32 4294901760, %v46_v2  ;;  %v43_v8 = vld [vmem:[#allocation2 + $0x50] sm:$0xff]  ;;  %v1236_v9 = vand.u32 4294901760, %v45_v6  ;;  %v1238_v10 = vand.u32 4294901760, %v44_v7  ;;  %v42_v12 = vld [vmem:[#allocation2 + $0x48] sm:$0xff]  ;;  %v41_v13 = vld [vmem:[#allocation2 + $0x40] sm:$0xff] }
   0x9   :  { %v1240_v11 = vand.u32 4294901760, %v43_v8  ;;  %66 = vmatpush.msra.mxu0 %v1230_v3  ;;  %v1244_v14 = vsub.f32 %v48_v0, %v1230_v3  ;;  %v1247_v15 = vsub.f32 %v47_v1, %v1232_v4  ;;  %262 = vmatpush.msra.mxu3 %v1230_v3  ;;  %v1253_v17 = vand.u32 4294901760, %v42_v12  ;;  %v40_v18 = vld [vmem:[#allocation2 + $0x38] sm:$0xff]  ;;  %v39_v26 = vld [vmem:[#allocation2 + $0x30] sm:$0xff]  ;;  %v38_v34 = vld [vmem:[#allocation2 + $0x28] sm:$0xff] }
   0xa   :  { %v1251_v16 = vsub.f32 %v46_v2, %v1234_v5  ;;  %v1256_v19 = vsub.f32 %v45_v6, %v1236_v9  ;;  %v1259_v20 = vsub.f32 %v44_v7, %v1238_v10  ;;  %v1269_v25 = vand.u32 4294901760, %v41_v13  ;;  %v37_v42 = vld [vmem:[#allocation2 + $0x20] sm:$0xff]  ;;  %v36_v48 = vld [vmem:[#allocation2 + $0x18] sm:$0xff]  ;;  %v35_v54 = vld [vmem:[#allocation2 + $0x10] sm:$0xff] }
   0xb   :  { %v1262_v21 = vsub.f32 %v43_v8, %v1240_v11  ;;  %68 = vmatpush.msra.mxu0 %v1232_v4  ;;  %209 = vmatpush.msra.mxu2 %v1244_v14  ;;  %v108_v22 = vand.u32 4294901760, %v1244_v14  ;;  %v2039_v23 = vand.u32 4294901760, %v1247_v15  ;;  %v1273_v28 = vand.u32 4294901760, %v40_v18  ;;  %v64_v59 = vld [vmem:[#allocation2 + $0xf8] sm:$0xff]  ;;  %v34_v61 = vld [vmem:[#allocation2 + $0x8] sm:$0xff]  ;;  %v33_v2 = vld [vmem:[#allocation2] sm:$0xff] }
   0xc   :  { %v2037_v24 = vand.u32 4294901760, %v1251_v16  ;;  %264 = vmatpush.msra.mxu3 %v1232_v4  ;;  %v2035_v27 = vand.u32 4294901760, %v1256_v19  ;;  %v1276_v29 = vsub.f32 %v42_v12, %v1253_v17  ;;  %v2033_v33 = vand.u32 4294901760, %v1259_v20  ;;  %v63_v6 = vld [vmem:[#allocation2 + $0xf0] sm:$0xff] }
   0xd   :  { %70 = vmatpush.msra.mxu0 %v1234_v5  ;;  %212 = vmatpush.msra.mxu2 %v1247_v15  ;;  %v109_v30 = vsub.f32 %v1244_v14, %v108_v22  ;;  %v115_v31 = vsub.f32 %v1247_v15, %v2039_v23  ;;  %v1291_v35 = vand.u32 4294901760, %v39_v26  ;;  %v2031_v36 = vand.u32 4294901760, %v1262_v21 }
   0xe   :  { %v121_v32 = vsub.f32 %v1251_v16, %v2037_v24  ;;  %266 = vmatpush.msra.mxu3 %v1234_v5  ;;  %v127_v39 = vsub.f32 %v1256_v19, %v2035_v27  ;;  %v1300_v40 = vsub.f32 %v41_v13, %v1269_v25  ;;  %v1303_v41 = vand.u32 4294901760, %v38_v34 }
   0xf   :  { %72 = vmatpush.msra.mxu0 %v1236_v9  ;;  %v110_v37 = vand.u32 4294901760, %v109_v30  ;;  %215 = vmatpush.msra.mxu2 %v1251_v16  ;;  %v116_v38 = vand.u32 4294901760, %v115_v31  ;;  %v133_v44 = vsub.f32 %v1259_v20, %v2033_v33  ;;  %v2030_v45 = vand.u32 4294901760, %v1276_v29 }
  0x10   :  { %268 = vmatpush.msra.mxu3 %v1236_v9  ;;  %v122_v43 = vand.u32 4294901760, %v121_v32  ;;  %v1311_v46 = vsub.f32 %v40_v18, %v1273_v28  ;;  %v139_v47 = vsub.f32 %v1262_v21, %v2031_v36  ;;  %v128_v49 = vand.u32 4294901760, %v127_v39  ;;  %v62_v32 = vld [vmem:[#allocation2 + $0xe8] sm:$0xff] }
  0x11   :  { %74 = vmatpush.msra.mxu0 %v1238_v10  ;;  %111 = vmatpush.msra.mxu1 %v110_v37  ;;  %v1319_v50 = vand.u32 4294901760, %v37_v42  ;;  %v2029_v51 = vand.u32 4294901760, %v1300_v40  ;;  %v1323_v52 = vsub.f32 %v39_v26, %v1291_v35  ;;  %v1328_v53 = vsub.f32 %v38_v34, %v1303_v41 }
  0x12   :  { %218 = vmatpush.msra.mxu2 %v1256_v19  ;;  %270 = vmatpush.msra.mxu3 %v1238_v10  ;;  %v134_v55 = vand.u32 4294901760, %v133_v44  ;;  %v145_v56 = vsub.f32 %v1276_v29, %v2030_v45  ;;  %v1334_v57 = vand.u32 4294901760, %v36_v48  ;;  %v2028_v58 = vand.u32 4294901760, %v1311_v46  ;;  %v61_v44 = vld [vmem:[#allocation2 + $0xe0] sm:$0xff] }
  0x13   :  { %76 = vmatpush.msra.mxu0 %v1240_v11  ;;  %117 = vmatpush.msra.mxu1 %v116_v38  ;;  %v140_v60 = vand.u32 4294901760, %v139_v47  ;;  %v151_v62 = vsub.f32 %v1300_v40, %v2029_v51  ;;  %v1343_v63 = vand.u32 4294901760, %v35_v54  ;;  %v2026_v0 = vand.u32 4294901760, %v1323_v52  ;;  %v57_v45 = vld [vmem:[#allocation2 + $0xc0] sm:$0xff] }
  0x14   :  { %221 = vmatpush.msra.mxu2 %v1259_v20  ;;  %272 = vmatpush.msra.mxu3 %v1240_v11  ;;  %v1347_v1 = vsub.f32 %v37_v42, %v1319_v50  ;;  %v2025_v7 = vand.u32 4294901760, %v1328_v53  ;;  %v1352_v8 = vand.u32 4294901760, %v64_v59  ;;  %v146_v12 = vand.u32 4294901760, %v145_v56 }
  0x15   :  { %78 = vmatpush.msra.mxu0 %v1253_v17  ;;  %123 = vmatpush.msra.mxu1 %v122_v43  ;;  %v157_v13 = vsub.f32 %v1311_v46, %v2028_v58  ;;  %v1358_v18 = vand.u32 4294901760, %v34_v61  ;;  %v1361_v26 = vsub.f32 %v36_v48, %v1334_v57  ;;  %v1365_v30 = vand.u32 4294901760, %v33_v2 }
  0x16   :  { %224 = vmatpush.msra.mxu2 %v1262_v21  ;;  %274 = vmatpush.msra.mxu3 %v1253_v17  ;;  %v1367_v31 = vand.u32 4294901760, %v63_v6  ;;  %v152_v34 = vand.u32 4294901760, %v151_v62  ;;  %v163_v37 = vsub.f32 %v1323_v52, %v2026_v0  ;;  %v2024_v38 = vand.u32 4294901760, %v1347_v1 }
  0x17   :  { %80 = vmatpush.msra.mxu0 %v1269_v25  ;;  %129 = vmatpush.msra.mxu1 %v128_v49  ;;  %2044 = vst [vmem:[#allocation8_spill] sm:$0xff] %v1365_v30  ;;  %v1375_v39 = vsub.f32 %v35_v54, %v1343_v63  ;;  %v169_v42 = vsub.f32 %v1328_v53, %v2025_v7  ;;  %v158_v47 = vand.u32 4294901760, %v157_v13  ;;  %v2027_v48 = vand.u32 4294901760, %v1361_v26  ;;  %v59_v13 = vld [vmem:[#allocation2 + $0xd0] sm:$0xff] }
  0x18   :  { %227 = vmatpush.msra.mxu2 %v1276_v29  ;;  %276 = vmatpush.msra.mxu3 %v1269_v25  ;;  %v1383_v43 = vsub.f32 %v64_v59, %v1352_v8  ;;  %v1388_v49 = vsub.f32 %v34_v61, %v1358_v18  ;;  %v1390_v54 = vand.u32 4294901760, %v62_v32  ;;  %v1398_v56 = vsub.f32 %v63_v6, %v1367_v31  ;;  %v60_v59 = vld [vmem:[#allocation2 + $0xd8] sm:$0xff] }
  0x19   :  { %82 = vmatpush.msra.mxu0 %v1273_v28  ;;  %135 = vmatpush.msra.mxu1 %v134_v55  ;;  %v1395_v55 = vsub.f32 %v33_v2, %v1365_v30  ;;  %v175_v61 = vsub.f32 %v1347_v1, %v2024_v38  ;;  %v2032_v62 = vand.u32 4294901760, %v1375_v39  ;;  %v170_v2 = vand.u32 4294901760, %v169_v42  ;;  %v58_v42 = vld [vmem:[#allocation2 + $0xc8] sm:$0xff] }
  0x1a   :  { %230 = vmatpush.msra.mxu2 %v1300_v40  ;;  %278 = vmatpush.msra.mxu3 %v1273_v28  ;;  %v2034_v6 = vand.u32 4294901760, %v1383_v43  ;;  %v1416_v38 = vsub.f32 %v62_v32, %v1390_v54  ;;  %v1418_v7 = vand.u32 4294901760, %v60_v59  ;;  %v1431_v51 = vand.u32 4294901760, %v59_v13 }
  0x1b   :  { %84 = vmatpush.msra.mxu0 %v1291_v35  ;;  %141 = vmatpush.msra.mxu1 %v140_v60  ;;  %v164_v60 = vand.u32 4294901760, %v163_v37  ;;  %v2036_v37 = vand.u32 4294901760, %v1388_v49  ;;  %v2040_v0 = vand.u32 4294901760, %v1395_v55  ;;  %v187_v32 = vsub.f32 %v1375_v39, %v2032_v62 }
  0x1c   :  { %233 = vmatpush.msra.mxu2 %v1311_v46  ;;  %280 = vmatpush.msra.mxu3 %v1291_v35  ;;  %v450_v36 = vsub.f32 %v1383_v43, %v2034_v6  ;;  %v2041_v62 = vand.u32 4294901760, %v1416_v38  ;;  %v1446_v33 = vsub.f32 %v60_v59, %v1418_v7  ;;  %v1453_v27 = vand.u32 4294901760, %v57_v45 }
  0x1d   :  { %86 = vmatpush.msra.mxu0 %v1303_v41  ;;  %147 = vmatpush.msra.mxu1 %v146_v12  ;;  %v1405_v12 = vand.u32 4294901760, %v61_v44  ;;  %v199_v59 = vsub.f32 %v1395_v55, %v2040_v0  ;;  %v1461_v24 = vsub.f32 %v59_v13, %v1431_v51  ;;  %v2045_v14 = vand.u32 4294901760, %v1247_v15 }
  0x1e   :  { %236 = vmatpush.msra.mxu2 %v1323_v52  ;;  %282 = vmatpush.msra.mxu3 %v1303_v41  ;;  %v462_v0 = vsub.f32 %v1416_v38, %v2041_v62  ;;  %v2047_v15 = vand.u32 4294901760, %v1251_v16  ;;  %v2049_v16 = vand.u32 4294901760, %v1256_v19  ;;  %v2051_v19 = vand.u32 4294901760, %v1259_v20 }
  0x1f   :  { %88 = vmatpush.msra.mxu0 %v1319_v50  ;;  %153 = vmatpush.msra.mxu1 %v152_v34  ;;  %v181_v34 = vsub.f32 %v1361_v26, %v2027_v48  ;;  %v176_v48 = vand.u32 4294901760, %v175_v61  ;;  %v1429_v58 = vsub.f32 %v61_v44, %v1405_v12  ;;  %v193_v44 = vsub.f32 %v1388_v49, %v2036_v37 }
  0x20   :  { %239 = vmatpush.msra.mxu2 %v1328_v53  ;;  %284 = vmatpush.msra.mxu3 %v1319_v50 }
  0x21   :  { %90 = vmatpush.msra.mxu0 %v1334_v57  ;;  %159 = vmatpush.msra.mxu1 %v158_v47  ;;  %v2038_v47 = vand.u32 4294901760, %v1398_v56  ;;  %v182_v61 = vand.u32 4294901760, %v181_v34  ;;  %v188_v34 = vand.u32 4294901760, %v187_v32  ;;  %v194_v32 = vand.u32 4294901760, %v193_v44 }
  0x22   :  { %242 = vmatpush.msra.mxu2 %v1347_v1  ;;  %286 = vmatpush.msra.mxu3 %v1334_v57  ;;  %v2046_v44 = vand.u32 4294901760, %v1429_v58 }
  0x23   :  { %92 = vmatpush.msra.mxu0 %v1343_v63  ;;  %165 = vmatpush.msra.mxu1 %v164_v60  ;;  %v1438_v60 = vand.u32 4294901760, %v58_v42  ;;  %v456_v6 = vsub.f32 %v1398_v56, %v2038_v47  ;;  %v451_v47 = vand.u32 4294901760, %v450_v36  ;;  %v1480_v36 = vsub.f32 %v57_v45, %v1453_v27 }
  0x24   :  { %245 = vmatpush.msra.mxu2 %v1361_v26  ;;  %288 = vmatpush.msra.mxu3 %v1343_v63  ;;  %v468_v62 = vsub.f32 %v1429_v58, %v2046_v44 }
  0x25   :  { %94 = vmatpush.msra.mxu0 %v1358_v18  ;;  %171 = vmatpush.msra.mxu1 %v170_v2  ;;  %v56_v2 = vld [vmem:[#allocation2 + $0xb8] sm:$0xff]  ;;  %v1467_v23 = vsub.f32 %v58_v42, %v1438_v60  ;;  %v54_v42 = vld [vmem:[#allocation2 + $0xa8] sm:$0xff] }
  0x26   :  { %248 = vmatpush.msra.mxu2 %v1375_v39  ;;  %290 = vmatpush.msra.mxu3 %v1358_v18  ;;  %v1474_v37 = vand.u32 4294901760, %v56_v2  ;;  %v1499_v13 = vand.u32 4294901760, %v54_v42 }
  0x27   :  { %96 = vmatpush.msra.mxu0 %v1365_v30  ;;  %177 = vmatpush.msra.mxu1 %v176_v48  ;;  %v55_v48 = vld [vmem:[#allocation2 + $0xb0] sm:$0xff] }
  0x28   :  { %251 = vmatpush.msra.mxu2 %v1388_v49  ;;  %292 = vmatpush.msra.mxu3 %v1365_v30  ;;  %v1487_v30 = vand.u32 4294901760, %v55_v48  ;;  %v1497_v44 = vsub.f32 %v56_v2, %v1474_v37 }
  0x29   :  { %303 = vmatpush.msrb.mxu0 %v108_v22  ;;  %183 = vmatpush.msra.mxu1 %v182_v61  ;;  %v457_v22 = vand.u32 4294901760, %v456_v6  ;;  %v200_v61 = vand.u32 4294901760, %v199_v59  ;;  %v53_v6 = vld [vmem:[#allocation2 + $0xa0] sm:$0xff]  ;;  %v2048_v59 = vand.u32 4294901760, %v1446_v33 }
  0x2a   :  { %254 = vmatpush.msra.mxu2 %v1395_v55  ;;  %452 = vmatpush.msrb.mxu3 %v451_v47  ;;  %v2043_v47 = vand.u32 4294901760, %v1480_v36  ;;  %v1509_v2 = vsub.f32 %v55_v48, %v1487_v30  ;;  %v1511_v45 = vand.u32 4294901760, %v53_v6 }
  0x2b   :  { %307 = vmatpush.msrb.mxu0 %v2045_v14  ;;  %189 = vmatpush.msra.mxu1 %v188_v34  ;;  %v463_v34 = vand.u32 4294901760, %v462_v0  ;;  %v474_v14 = vsub.f32 %v1446_v33, %v2048_v59  ;;  %v469_v0 = vand.u32 4294901760, %v468_v62  ;;  %v31_v62 = vld [vmem:[%s2020_s0] sm:$0xff] }
  0x2c   :  { %407 = vmatpush.msrb.mxu2 %v1352_v8  ;;  %458 = vmatpush.msrb.mxu3 %v457_v22  ;;  %v2052_v22 = vand.u32 4294901760, %v1467_v23 }
  0x2d   :  { %311 = vmatpush.msrb.mxu0 %v2047_v15  ;;  %195 = vmatpush.msra.mxu1 %v194_v32  ;;  %v52_v15 = vld [vmem:[#allocation2 + $0x98] sm:$0xff]  ;;  %v2050_v32 = vand.u32 4294901760, %v1461_v24  ;;  %v475_v48 = vand.u32 4294901760, %v474_v14 }
  0x2e   :  { %409 = vmatpush.msrb.mxu2 %v1367_v31  ;;  %464 = vmatpush.msrb.mxu3 %v463_v34  ;;  %v1527_v20 = vand.u32 4294901760, %v52_v15 }
  0x2f   :  { %315 = vmatpush.msrb.mxu0 %v2049_v16  ;;  %201 = vmatpush.msra.mxu1 %v200_v61  ;;  %v480_v59 = vsub.f32 %v1461_v24, %v2050_v32  ;;  %v486_v61 = vsub.f32 %v1467_v23, %v2052_v22  ;;  %v1525_v32 = vsub.f32 %v54_v42, %v1499_v13  ;;  %v51_v22 = vld [vmem:[#allocation2 + $0x90] sm:$0xff]  ;;  %v1540_v16 = vand.u32 4294901760, %v31_v62 }
  0x30   :  { %411 = vmatpush.msrb.mxu2 %v1390_v54  ;;  %470 = vmatpush.msrb.mxu3 %v469_v0  ;;  %v1538_v42 = vsub.f32 %v53_v6, %v1511_v45  ;;  %v2055_v0 = vand.u32 4294901760, %v1497_v44  ;;  %v1550_v6 = vand.u32 4294901760, %v51_v22  ;;  %v1553_v14 = vsub.f32 %v52_v15, %v1527_v20 }
  0x31   :  { %319 = vmatpush.msrb.mxu0 %v2051_v19  ;;  %370 = vmatpush.msrb.mxu1 %v1230_v3  ;;  %v2053_v3 = vand.u32 4294901760, %v1262_v21  ;;  %v492_v19 = vsub.f32 %v1480_v36, %v2043_v47  ;;  %v481_v34 = vand.u32 4294901760, %v480_v59  ;;  %v2054_v21 = vand.u32 4294901760, %v1276_v29  ;;  %v49_v47 = vld [vmem:[#allocation2 + $0x80] sm:$0xff] }
  0x32   :  { %413 = vmatpush.msrb.mxu2 %v1405_v12  ;;  %476 = vmatpush.msrb.mxu3 %v475_v48  ;;  %v498_v59 = vsub.f32 %v1497_v44, %v2055_v0  ;;  %v2056_v29 = vand.u32 4294901760, %v1300_v40  ;;  %v1564_v0 = vsub.f32 %v31_v62, %v1540_v16  ;;  %v2058_v40 = vand.u32 4294901760, %v1311_v46 }
  0x33   :  { %323 = vmatpush.msrb.mxu0 %v2053_v3  ;;  %372 = vmatpush.msrb.mxu1 %v1232_v4  ;;  %v487_v4 = vand.u32 4294901760, %v486_v61  ;;  %v50_v3 = vld [vmem:[#allocation2 + $0x88] sm:$0xff]  ;;  %v2057_v61 = vand.u32 4294901760, %v1509_v2  ;;  %v1577_v62 = vsub.f32 %v51_v22, %v1550_v6  ;;  %v1582_v46 = vand.u32 4294901760, %v49_v47 }
  0x34   :  { %415 = vmatpush.msrb.mxu2 %v1418_v7  ;;  %482 = vmatpush.msrb.mxu3 %v481_v34  ;;  %v1566_v15 = vand.u32 4294901760, %v50_v3 }
  0x35   :  { %327 = vmatpush.msrb.mxu0 %v2054_v21  ;;  %374 = vmatpush.msrb.mxu1 %v1234_v5  ;;  %v493_v5 = vand.u32 4294901760, %v492_v19  ;;  %v504_v48 = vsub.f32 %v1509_v2, %v2057_v61  ;;  %v515_v21 = vand.u32 4294901760, %v1538_v42  ;;  %v2059_v19 = vand.u32 4294901760, %v1525_v32 }
  0x36   :  { %417 = vmatpush.msrb.mxu2 %v1431_v51  ;;  %488 = vmatpush.msrb.mxu3 %v487_v4  ;;  %v2060_v61 = vand.u32 4294901760, %v1323_v52  ;;  %v1590_v22 = vsub.f32 %v50_v3, %v1566_v15  ;;  %v2061_v52 = vand.u32 4294901760, %v1328_v53  ;;  %v527_v3 = vand.u32 4294901760, %v1577_v62 }
  0x37   :  { %331 = vmatpush.msrb.mxu0 %v2056_v29  ;;  %376 = vmatpush.msrb.mxu1 %v1236_v9  ;;  %v499_v9 = vand.u32 4294901760, %v498_v59  ;;  %v510_v34 = vsub.f32 %v1525_v32, %v2059_v19  ;;  %v521_v29 = vand.u32 4294901760, %v1553_v14  ;;  %v516_v4 = vsub.f32 %v1538_v42, %v515_v21 }
  0x38   :  { %419 = vmatpush.msrb.mxu2 %v1438_v60  ;;  %494 = vmatpush.msrb.mxu3 %v493_v5  ;;  %v99_v59 = vand.u32 4294901760, %v1564_v0  ;;  %v533_v19 = vand.u32 4294901760, %v1590_v22 }
  0x39   :  { %335 = vmatpush.msrb.mxu0 %v2058_v40  ;;  %378 = vmatpush.msrb.mxu1 %v1238_v10  ;;  %v505_v10 = vand.u32 4294901760, %v504_v48  ;;  %v511_v5 = vand.u32 4294901760, %v510_v34  ;;  %v522_v48 = vsub.f32 %v1553_v14, %v521_v29  ;;  %v2062_v40 = vand.u32 4294901760, %v1347_v1 }
  0x3a   :  { %421 = vmatpush.msrb.mxu2 %v1453_v27  ;;  %500 = vmatpush.msrb.mxu3 %v499_v9  ;;  %v517_v53 = vand.u32 4294901760, %v516_v4  ;;  %v100_v9 = vsub.f32 %v1564_v0, %v99_v59  ;;  %v528_v1 = vsub.f32 %v1577_v62, %v527_v3 }
  0x3b   :  { %339 = vmatpush.msrb.mxu0 %v2060_v61  ;;  %380 = vmatpush.msrb.mxu1 %v1240_v11  ;;  %v32_v11 = vld [vmem:[%s2020_s0 + $0x8] sm:$0xff]  ;;  %v2063_v61 = vand.u32 4294901760, %v1361_v26 }
  0x3c   :  { %423 = vmatpush.msrb.mxu2 %v1474_v37  ;;  %506 = vmatpush.msrb.mxu3 %v505_v10  ;;  %v1612_v34 = vand.u32 4294901760, %v32_v11  ;;  %v101_v26 = vand.u32 4294901760, %v100_v9 }
  0x3d   :  { %343 = vmatpush.msrb.mxu0 %v2061_v52  ;;  %382 = vmatpush.msrb.mxu1 %v1253_v17  ;;  %v1607_v17 = vsub.f32 %v49_v47, %v1582_v46  ;;  %v2064_v47 = vand.u32 4294901760, %v1375_v39  ;;  %v2065_v52 = vand.u32 4294901760, %v1388_v49  ;;  %v2066_v39 = vand.u32 4294901760, %v1395_v55 }
  0x3e   :  { %425 = vmatpush.msrb.mxu2 %v1487_v30  ;;  %512 = vmatpush.msrb.mxu3 %v511_v5  ;;  %v1630_v4 = vsub.f32 %v32_v11, %v1612_v34 }
  0x3f   :  { %347 = vmatpush.msrb.mxu0 %v2062_v40  ;;  %384 = vmatpush.msrb.mxu1 %v1269_v25  ;;  %v523_v25 = vand.u32 4294901760, %v522_v48  ;;  %v539_v10 = vand.u32 4294901760, %v1607_v17  ;;  %v775_v48 = vld [vmem:[%s2022_s2 + $0x48] sm:$0xff] }
  0x40   :  { %427 = vmatpush.msrb.mxu2 %v1499_v13  ;;  %518 = vmatpush.msrb.mxu3 %v517_v53  ;;  %v440_v11 = vand.u32 4294901760, %v1630_v4  ;;  %v1824_v53 = vand.u32 4294901760, %v775_v48 }
  0x41   :  { %351 = vmatpush.msrb.mxu0 %v2063_v61  ;;  %386 = vmatpush.msrb.mxu1 %v1273_v28  ;;  %v534_v28 = vsub.f32 %v1590_v22, %v533_v19  ;;  %v540_v5 = vsub.f32 %v1607_v17, %v539_v10 }
  0x42   :  { %429 = vmatpush.msrb.mxu2 %v1511_v45  ;;  %524 = vmatpush.msrb.mxu3 %v523_v25  ;;  %v1837_v25 = vsub.f32 %v775_v48, %v1824_v53 }
  0x43   :  { %355 = vmatpush.msrb.mxu0 %v2064_v47  ;;  %388 = vmatpush.msrb.mxu1 %v1291_v35  ;;  %v529_v35 = vand.u32 4294901760, %v528_v1  ;;  %v535_v49 = vand.u32 4294901760, %v534_v28 }
  0x44   :  { %431 = vmatpush.msrb.mxu2 %v1527_v20  ;;  %102 = vmatmul.f32.vlgmr.msra.gmra.mxu0 %v101_v26  ;;  %v861_v28 = vand.u32 4294901760, %v1837_v25 }
  0x45   :  { %359 = vmatpush.msrb.mxu0 %v2065_v52  ;;  %390 = vmatpush.msrb.mxu1 %v1303_v41  ;;  %v541_v41 = vand.u32 4294901760, %v540_v5 }
  0x46   :  { %433 = vmatpush.msrb.mxu2 %v1550_v6  ;;  %530 = vmatpush.msrb.mxu3 %v529_v35  ;;  %v772_v35 = vld [vmem:[%s2022_s2 + $0x30] sm:$0xff]  ;;  %v862_v5 = vsub.f32 %v1837_v25, %v861_v28 }
  0x47   :  { %363 = vmatpush.msrb.mxu0 %v2066_v39  ;;  %392 = vmatpush.msrb.mxu1 %v1319_v50  ;;  %v441_v50 = vsub.f32 %v1630_v4, %v440_v11 }
  0x48   :  { %435 = vmatpush.msrb.mxu2 %v1566_v15  ;;  %536 = vmatpush.msrb.mxu3 %v535_v49 }
  0x49   :  { %550 = vmatpush.msra.mxu0 %v1383_v43  ;;  %394 = vmatpush.msrb.mxu1 %v1334_v57  ;;  %v2067_v57 = vand.u32 4294901760, %v1383_v43  ;;  %v442_v55 = vand.u32 4294901760, %v441_v50  ;;  %v2070_v43 = vand.u32 4294901760, %v1416_v38  ;;  %v771_v50 = vld [vmem:[%s2022_s2 + $0x28] sm:$0xff] }
  0x4a   :  { %257 = vmatmul.f32.vlgmr.msra.gmra.mxu2 %v1564_v0  ;;  %296 = vmatmul.f32.vlgmr.msra.gmra.mxu3 %v99_v59  ;;  %v2069_v0 = vld [vmem:[#allocation8_spill] sm:$0xff] }
  0x4b   :  { %553 = vmatpush.msra.mxu0 %v1398_v56  ;;  %396 = vmatpush.msrb.mxu1 %v1343_v63  ;;  %v2068_v63 = vand.u32 4294901760, %v1398_v56  ;;  %v779_v56 = vld [vmem:[%s2022_s2 + $0x68] sm:$0xff] }
  0x4c   :  { %437 = vmatpush.msrb.mxu2 %v1582_v46  ;;  %542 = vmatpush.msrb.mxu3 %v541_v41  ;;  %v1870_v41 = vand.u32 4294901760, %v772_v35 }
  0x4d   :  { %556 = vmatpush.msra.mxu0 %v1416_v38  ;;  %398 = vmatpush.msrb.mxu1 %v1358_v18  ;;  %v2071_v18 = vand.u32 4294901760, %v1429_v58 }
  0x4e   :  { %644 = vmatpush.msra.mxu2 %v2067_v57  ;;  %203 = vmatmul.f32.vlgmr.msra.gmra.mxu1 %v1540_v16  ;;  %v863_v57 = vand.u32 4294901760, %v862_v5 }
  0x4f   :  { %559 = vmatpush.msra.mxu0 %v1429_v58  ;;  %711 = vmatpush.msra.mxu3 %v1352_v8  ;;  %v2073_v58 = vand.u32 4294901760, %v1461_v24 }
  0x50   :  { %648 = vmatpush.msra.mxu2 %v2068_v63  ;;  %400 = vmatpush.msrb.mxu1 %v2069_v0  ;;  %v1881_v0 = vand.u32 4294901760, %v771_v50 }
  0x51   :  { %562 = vmatpush.msra.mxu0 %v1446_v33  ;;  %713 = vmatpush.msra.mxu3 %v1367_v31 }
  0x52   :  { %603 = vmatpush.msra.mxu1 %v1352_v8  ;;  %652 = vmatpush.msra.mxu2 %v2070_v43  ;;  %v2072_v8 = vand.u32 4294901760, %v1446_v33  ;;  %v2074_v33 = vand.u32 4294901760, %v1467_v23  ;;  %v1884_v43 = vsub.f32 %v772_v35, %v1870_v41 }
  0x53   :  { %443 = vmatmul.f32.vlgmr.msrb.gmra.mxu2 %v442_v55  ;;  %565 = vmatpush.msra.mxu0 %v1461_v24  ;;  %v2076_v24 = vand.u32 4294901760, %v1497_v44 }
  0x54   :  { %605 = vmatpush.msra.mxu1 %v1367_v31  ;;  %656 = vmatpush.msra.mxu2 %v2071_v18  ;;  %v2075_v31 = vand.u32 4294901760, %v1480_v36  ;;  %v770_v18 = vld [vmem:[%s2022_s2 + $0x20] sm:$0xff] }
  0x55   :  { %715 = vmatpush.msra.mxu3 %v1390_v54  ;;  %365 = vmatmul.f32.vlgmr.msrb.gmra.mxu0 %v1540_v16 }
  0x56   :  { %544 = vmatmul.f32.vlgmr.msrb.gmra.mxu3 %v1612_v34  ;;  %568 = vmatpush.msra.mxu0 %v1467_v23  ;;  %v2077_v23 = vand.u32 4294901760, %v1509_v2 }
  0x57   :  { %607 = vmatpush.msra.mxu1 %v1390_v54  ;;  %660 = vmatpush.msra.mxu2 %v2072_v8 }
  0x58   :  { %717 = vmatpush.msra.mxu3 %v1405_v12  ;;  %402 = vmatmul.f32.vlgmr.msrb.gmra.mxu1 %v1540_v16 }
  0x59   :  { %571 = vmatpush.msra.mxu0 %v1480_v36  ;;  %609 = vmatpush.msra.mxu1 %v1405_v12  ;;  %v777_v36 = vld [vmem:[%s2022_s2 + $0x58] sm:$0xff] }
  0x5a   :  { %664 = vmatpush.msra.mxu2 %v2073_v58  ;;  %719 = vmatpush.msra.mxu3 %v1418_v7 }
  0x5b   :  { %574 = vmatpush.msra.mxu0 %v1497_v44  ;;  %611 = vmatpush.msra.mxu1 %v1418_v7 }
  0x5c   :  { %668 = vmatpush.msra.mxu2 %v2074_v33  ;;  %721 = vmatpush.msra.mxu3 %v1431_v51  ;;  %v1895_v33 = vsub.f32 %v771_v50, %v1881_v0 }
  0x5d   :  { %577 = vmatpush.msra.mxu0 %v1509_v2  ;;  %613 = vmatpush.msra.mxu1 %v1431_v51  ;;  %v2078_v51 = vand.u32 4294901760, %v1525_v32 }
  0x5e   :  { %672 = vmatpush.msra.mxu2 %v2075_v31  ;;  %723 = vmatpush.msra.mxu3 %v1438_v60  ;;  %v1897_v31 = vand.u32 4294901760, %v770_v18 }
  0x5f   :  { %580 = vmatpush.msra.mxu0 %v1525_v32  ;;  %615 = vmatpush.msra.mxu1 %v1438_v60  ;;  %v1764_v60 = vand.u32 4294901760, %v779_v56  ;;  %v1786_v32 = vand.u32 4294901760, %v777_v36 }
  0x60   :  { %676 = vmatpush.msra.mxu2 %v2076_v24  ;;  %725 = vmatpush.msra.mxu3 %v1453_v27  ;;  %v879_v24 = vand.u32 4294901760, %v1884_v43 }
  0x61   :  { %583 = vmatpush.msra.mxu0 %v1538_v42  ;;  %617 = vmatpush.msra.mxu1 %v1453_v27  ;;  %v781_v27 = vld [vmem:[%s2022_s2 + $0x78] sm:$0xff]  ;;  %v1780_v2 = vsub.f32 %v779_v56, %v1764_v60 }
  0x62   :  { %680 = vmatpush.msra.mxu2 %v2077_v23  ;;  %727 = vmatpush.msra.mxu3 %v1474_v37  ;;  %v1745_v7 = vand.u32 4294901760, %v781_v27  ;;  %v769_v23 = vld [vmem:[%s2022_s2 + $0x18] sm:$0xff] }
  0x63   :  { %586 = vmatpush.msra.mxu0 %v1553_v14  ;;  %619 = vmatpush.msra.mxu1 %v1474_v37  ;;  %v837_v42 = vand.u32 4294901760, %v1780_v2  ;;  %v1910_v56 = vand.u32 4294901760, %v769_v23 }
  0x64   :  { %684 = vmatpush.msra.mxu2 %v2078_v51  ;;  %729 = vmatpush.msra.mxu3 %v1487_v30  ;;  %v1751_v38 = vsub.f32 %v781_v27, %v1745_v7  ;;  %v885_v27 = vand.u32 4294901760, %v1895_v33 }
  0x65   :  { %589 = vmatpush.msra.mxu0 %v1577_v62  ;;  %621 = vmatpush.msra.mxu1 %v1487_v30  ;;  %v780_v30 = vld [vmem:[%s2022_s2 + $0x70] sm:$0xff]  ;;  %v838_v62 = vsub.f32 %v1780_v2, %v837_v42 }
  0x66   :  { %688 = vmatpush.msra.mxu2 %v515_v21  ;;  %731 = vmatpush.msra.mxu3 %v1499_v13  ;;  %v1753_v54 = vand.u32 4294901760, %v780_v30  ;;  %v825_v12 = vand.u32 4294901760, %v1751_v38  ;;  %v1799_v21 = vsub.f32 %v777_v36, %v1786_v32  ;;  %v768_v36 = vld [vmem:[%s2022_s2 + $0x10] sm:$0xff] }
  0x67   :  { %592 = vmatpush.msra.mxu0 %v1590_v22  ;;  %623 = vmatpush.msra.mxu1 %v1499_v13  ;;  %v778_v13 = vld [vmem:[%s2022_s2 + $0x60] sm:$0xff] }
  0x68   :  { %692 = vmatpush.msra.mxu2 %v521_v29  ;;  %733 = vmatpush.msra.mxu3 %v1511_v45  ;;  %v1762_v37 = vsub.f32 %v780_v30, %v1753_v54  ;;  %v1782_v16 = vand.u32 4294901760, %v778_v13  ;;  %v849_v22 = vand.u32 4294901760, %v1799_v21  ;;  %v1908_v30 = vsub.f32 %v770_v18, %v1897_v31 }
  0x69   :  { %595 = vmatpush.msra.mxu0 %v1607_v17  ;;  %625 = vmatpush.msra.mxu1 %v1511_v45  ;;  %v826_v45 = vsub.f32 %v1751_v38, %v825_v12 }
  0x6a   :  { %696 = vmatpush.msra.mxu2 %v527_v3  ;;  %735 = vmatpush.msra.mxu3 %v1527_v20  ;;  %v831_v44 = vand.u32 4294901760, %v1762_v37  ;;  %v839_v3 = vand.u32 4294901760, %v838_v62  ;;  %v850_v9 = vsub.f32 %v1799_v21, %v849_v22  ;;  %v767_v62 = vld [vmem:[%s2022_s2 + $0x8] sm:$0xff] }
  0x6b   :  { %598 = vmatmul.f32.vlgmr.msra.gmra.mxu0 %v1630_v4  ;;  %627 = vmatpush.msra.mxu1 %v1527_v20  ;;  %v827_v20 = vand.u32 4294901760, %v826_v45  ;;  %v886_v45 = vsub.f32 %v1895_v33, %v885_v27 }
  0x6c   :  { %700 = vmatpush.msra.mxu2 %v533_v19  ;;  %737 = vmatpush.msra.mxu3 %v1550_v6  ;;  %v832_v14 = vsub.f32 %v1762_v37, %v831_v44  ;;  %v774_v19 = vld [vmem:[%s2022_s2 + $0x40] sm:$0xff]  ;;  %v851_v47 = vand.u32 4294901760, %v850_v9 }
  0x6d   :  { %629 = vmatpush.msra.mxu1 %v1550_v6  ;;  %783 = vmatpush.msrb.mxu0 %v1745_v7  ;;  %v1794_v6 = vsub.f32 %v778_v13, %v1782_v16  ;;  %v1839_v1 = vand.u32 4294901760, %v774_v19  ;;  %v880_v13 = vsub.f32 %v1884_v43, %v879_v24 }
  0x6e   :  { %704 = vmatpush.msra.mxu2 %v539_v10  ;;  %739 = vmatpush.msra.mxu3 %v1566_v15  ;;  %v833_v29 = vand.u32 4294901760, %v832_v14  ;;  %v773_v10 = vld [vmem:[%s2022_s2 + $0x38] sm:$0xff]  ;;  %v1926_v14 = vsub.f32 %v769_v23, %v1910_v56 }
  0x6f   :  { %706 = vmatmul.f32.vlgmr.msra.gmra.mxu2 %v1612_v34  ;;  %631 = vmatpush.msra.mxu1 %v1566_v15  ;;  %v776_v15 = vld [vmem:[%s2022_s2 + $0x50] sm:$0xff]  ;;  %v1852_v4 = vsub.f32 %v774_v19, %v1839_v1  ;;  %v1854_v52 = vand.u32 4294901760, %v773_v10 }
  0x70   :  { %741 = vmatpush.msra.mxu3 %v1582_v46  ;;  %785 = vmatpush.msrb.mxu0 %v1753_v54  ;;  %v1809_v59 = vand.u32 4294901760, %v776_v15  ;;  %v897_v9 = vand.u32 4294901760, %v1926_v14 }
  0x71   :  { %743 = vmatmul.f32.vlgmr.msra.gmra.mxu3 %v1612_v34  ;;  %633 = vmatpush.msra.mxu1 %v1582_v46  ;;  %v843_v46 = vand.u32 4294901760, %v1794_v6  ;;  %v867_v49 = vand.u32 4294901760, %v1852_v4 }
  0x72   :  { %637 = vmatmul.f32.vlgmr.msra.gmra.mxu1 %v440_v11  ;;  %979 = vmatpush.msrb.mxu3 %v1745_v7  ;;  %v1822_v17 = vsub.f32 %v776_v15, %v1809_v59  ;;  %v1867_v11 = vsub.f32 %v773_v10, %v1854_v52  ;;  %v1928_v15 = vand.u32 4294901760, %v768_v36  ;;  %v898_v35 = vsub.f32 %v1926_v14, %v897_v9 }
  0x73   :  { %926 = vmatpush.msrb.mxu2 %v1751_v38  ;;  %787 = vmatpush.msrb.mxu0 %v1764_v60  ;;  %v844_v40 = vsub.f32 %v1794_v6, %v843_v46  ;;  %v868_v63 = vsub.f32 %v1852_v4, %v867_v49 }
  0x74   :  { %981 = vmatpush.msrb.mxu3 %v1753_v54  ;;  %828 = vmatpush.msrb.mxu1 %v827_v20  ;;  %v855_v61 = vand.u32 4294901760, %v1822_v17  ;;  %v873_v55 = vand.u32 4294901760, %v1867_v11  ;;  %v891_v20 = vand.u32 4294901760, %v1908_v30  ;;  %v1941_v19 = vsub.f32 %v768_v36, %v1928_v15 }
  0x75   :  { %929 = vmatpush.msrb.mxu2 %v1762_v37  ;;  %789 = vmatpush.msrb.mxu0 %v1782_v16  ;;  %v845_v34 = vand.u32 4294901760, %v844_v40  ;;  %v869_v8 = vand.u32 4294901760, %v868_v63  ;;  %v899_v18 = vand.u32 4294901760, %v898_v35 }
  0x76   :  { %983 = vmatpush.msrb.mxu3 %v1764_v60  ;;  %834 = vmatpush.msrb.mxu1 %v833_v29  ;;  %v856_v26 = vsub.f32 %v1822_v17, %v855_v61  ;;  %v874_v58 = vsub.f32 %v1867_v11, %v873_v55  ;;  %v881_v29 = vand.u32 4294901760, %v880_v13  ;;  %v892_v40 = vsub.f32 %v1908_v30, %v891_v20 }
  0x77   :  { %932 = vmatpush.msrb.mxu2 %v1780_v2  ;;  %791 = vmatpush.msrb.mxu0 %v1786_v32 }
  0x78   :  { %985 = vmatpush.msrb.mxu3 %v1782_v16  ;;  %840 = vmatpush.msrb.mxu1 %v839_v3  ;;  %v857_v39 = vand.u32 4294901760, %v856_v26  ;;  %v875_v51 = vand.u32 4294901760, %v874_v58  ;;  %v887_v3 = vand.u32 4294901760, %v886_v45  ;;  %v893_v26 = vand.u32 4294901760, %v892_v40 }
  0x79   :  { %935 = vmatpush.msrb.mxu2 %v1794_v6  ;;  %793 = vmatpush.msrb.mxu0 %v1809_v59 }
  0x7a   :  { %987 = vmatpush.msrb.mxu3 %v1786_v32  ;;  %846 = vmatpush.msrb.mxu1 %v845_v34  ;;  %v1944_v34 = vand.u32 4294901760, %v767_v62 }
  0x7b   :  { %938 = vmatpush.msrb.mxu2 %v1799_v21  ;;  %795 = vmatpush.msrb.mxu0 %v1824_v53 }
  0x7c   :  { %989 = vmatpush.msrb.mxu3 %v1809_v59  ;;  %852 = vmatpush.msrb.mxu1 %v851_v47  ;;  %v766_v47 = vld [vmem:[%s2022_s2] sm:$0xff]  ;;  %v1957_v50 = vsub.f32 %v767_v62, %v1944_v34  ;;  %s1206_s2 = smov [#allocation5]  }
  0x7d   :  { %941 = vmatpush.msrb.mxu2 %v1822_v17  ;;  %797 = vmatpush.msrb.mxu0 %v1839_v1  ;;  %s1130_s24 = sshll.u32 %s1206_s2, 4  ;;  %s1131_s24 = int_to_ptr.vmem [resolvable:$true] %s1130_s24 }
  0x7e   :  { %991 = vmatpush.msrb.mxu3 %v1824_v53  ;;  %858 = vmatpush.msrb.mxu1 %v857_v39  ;;  %v903_v39 = vand.u32 4294901760, %v1941_v19  ;;  %v909_v58 = vand.u32 4294901760, %v1957_v50 }
  0x7f   :  { %944 = vmatpush.msrb.mxu2 %v1837_v25  ;;  %799 = vmatpush.msrb.mxu0 %v1854_v52 }
  0x80   :  { %993 = vmatpush.msrb.mxu3 %v1839_v1  ;;  %864 = vmatpush.msrb.mxu1 %v863_v57  ;;  %v1959_v57 = vand.u32 4294901760, %v766_v47  ;;  %v910_v36 = vsub.f32 %v1957_v50, %v909_v58 }
  0x81   :  { %947 = vmatpush.msrb.mxu2 %v1852_v4  ;;  %801 = vmatpush.msrb.mxu0 %v1870_v41 }
  0x82   :  { %995 = vmatpush.msrb.mxu3 %v1854_v52  ;;  %870 = vmatpush.msrb.mxu1 %v869_v8  ;;  %v904_v8 = vsub.f32 %v1941_v19, %v903_v39  ;;  %v914_v23 = vsub.f32 %v766_v47, %v1959_v57  ;;  %v911_v62 = vand.u32 4294901760, %v910_v36 }
  0x83   :  { %950 = vmatpush.msrb.mxu2 %v1867_v11  ;;  %803 = vmatpush.msrb.mxu0 %v1881_v0 }
  0x84   :  { %997 = vmatpush.msrb.mxu3 %v1870_v41  ;;  %876 = vmatpush.msrb.mxu1 %v875_v51  ;;  %v905_v51 = vand.u32 4294901760, %v904_v8  ;;  %v915_v45 = vand.u32 4294901760, %v914_v23 }
  0x85   :  { %953 = vmatpush.msrb.mxu2 %v1884_v43  ;;  %805 = vmatpush.msrb.mxu0 %v1897_v31 }
  0x86   :  { %999 = vmatpush.msrb.mxu3 %v1881_v0  ;;  %882 = vmatpush.msrb.mxu1 %v881_v29 }
  0x87   :  { %956 = vmatpush.msrb.mxu2 %v1895_v33  ;;  %807 = vmatpush.msrb.mxu0 %v1910_v56 }
  0x88   :  { %1001 = vmatpush.msrb.mxu3 %v1897_v31  ;;  %888 = vmatpush.msrb.mxu1 %v887_v3 }
  0x89   :  { %959 = vmatpush.msrb.mxu2 %v1908_v30  ;;  %809 = vmatpush.msrb.mxu0 %v1928_v15 }
  0x8a   :  { %1003 = vmatpush.msrb.mxu3 %v1910_v56  ;;  %894 = vmatpush.msrb.mxu1 %v893_v26 }
  0x8b   :  { %962 = vmatpush.msrb.mxu2 %v1926_v14  ;;  %811 = vmatpush.msrb.mxu0 %v1944_v34 }
  0x8c   :  { %1005 = vmatpush.msrb.mxu3 %v1928_v15  ;;  %900 = vmatpush.msrb.mxu1 %v899_v18 }
  0x8d   :  { %965 = vmatpush.msrb.mxu2 %v1941_v19  ;;  %813 = vmatpush.msrb.mxu0 %v1959_v57 }
  0x8e   :  { %1007 = vmatpush.msrb.mxu3 %v1944_v34  ;;  %906 = vmatpush.msrb.mxu1 %v905_v51 }
  0x8f   :  { %1020 = vmatpush.msra.mxu0 %v825_v12  ;;  %968 = vmatpush.msrb.mxu2 %v1957_v50 }
  0x90   :  { %1009 = vmatpush.msrb.mxu3 %v1959_v57  ;;  %912 = vmatpush.msrb.mxu1 %v911_v62 }
  0x91   :  { %1024 = vmatpush.msra.mxu0 %v831_v44  ;;  %971 = vmatpush.msrb.mxu2 %v914_v23 }
  0x93   :  { %1028 = vmatpush.msra.mxu0 %v837_v42 }
  0x95   :  { %1032 = vmatpush.msra.mxu0 %v843_v46 }
  0x97   :  { %1036 = vmatpush.msra.mxu0 %v849_v22 }
  0x99   :  { %1040 = vmatpush.msra.mxu0 %v855_v61 }
  0x9b   :  { %1044 = vmatpush.msra.mxu0 %v861_v28 }
  0x9d   :  { %1048 = vmatpush.msra.mxu0 %v867_v49 }
  0x9f   :  { %1052 = vmatpush.msra.mxu0 %v873_v55 }
  0xa1   :  { %1056 = vmatpush.msra.mxu0 %v879_v24 }
  0xa3   :  { %1060 = vmatpush.msra.mxu0 %v885_v27 }
  0xa5   :  { %1064 = vmatpush.msra.mxu0 %v891_v20 }
  0xa7   :  { %1068 = vmatpush.msra.mxu0 %v897_v9 }
  0xa9   :  { %1072 = vmatpush.msra.mxu0 %v903_v39 }
  0xab   :  { %1076 = vmatpush.msra.mxu0 %v909_v58 }
  0xad   :  { %1080 = vmatpush.msra.mxu0 %v915_v45 }
  0xc1   :  { %v103_v10 = vpop.f32.mrf.mxu0 }
  0xcb   :  { %v204_v48 = vpop.f32.mrf.mxu1 }
  0xcc   :  { %v205_v5 = vadd.f32 %v204_v48, %v103_v10  ;;  %v916_v48 = vsub.f32 %v914_v23, %v915_v45 }
  0xcd   :  { %v258_v63 = vpop.f32.mrf.mxu2  ;;  %v297_v29 = vpop.f32.mrf.mxu3 }
  0xce   :  { %v259_v13 = vadd.f32 %v258_v63, %v205_v5  ;;  %v917_v12 = vand.u32 4294901760, %v916_v48 }
  0xd0   :  { %v298_v38 = vadd.f32 %v297_v29, %v259_v13  ;;  %918 = vmatpush.msrb.mxu1 %v917_v12 }
  0xd2   :  { %v366_v3 = vpop.f32.mrf.mxu0  ;;  %1087 = vmatpush.msra.mxu1 %v1745_v7 }
  0xd3   :  { %v367_v37 = vadd.f32 %v366_v3, %v298_v38 }
  0xd4   :  { %1089 = vmatpush.msra.mxu1 %v1753_v54 }
  0xd5   :  { %v403_v44 = vpop.f32.mrf.mxu1 }
  0xd6   :  { %1091 = vmatpush.msra.mxu1 %v1764_v60  ;;  %v404_v2 = vadd.f32 %v403_v44, %v367_v37  ;;  %v444_v42 = vpop.f32.mrf.mxu2 }
  0xd8   :  { %1093 = vmatpush.msra.mxu1 %v1782_v16  ;;  %v445_v7 = vadd.f32 %v444_v42, %v404_v2 }
  0xd9   :  { %v545_v54 = vpop.f32.mrf.mxu3 }
  0xda   :  { %1095 = vmatpush.msra.mxu1 %v1786_v32  ;;  %v546_v16 = vadd.f32 %v545_v54, %v445_v7 }
  0xdc   :  { %1097 = vmatpush.msra.mxu1 %v1809_v59 }
  0xde   :  { %1099 = vmatpush.msra.mxu1 %v1824_v53 }
  0xe0   :  { %1101 = vmatpush.msra.mxu1 %v1839_v1 }
  0xe2   :  { %1103 = vmatpush.msra.mxu1 %v1854_v52 }
  0xe4   :  { %1105 = vmatpush.msra.mxu1 %v1870_v41 }
  0xe6   :  { %1107 = vmatpush.msra.mxu1 %v1881_v0 }
  0xe8   :  { %v599_v60 = vpop.f32.mrf.mxu0  ;;  %1109 = vmatpush.msra.mxu1 %v1897_v31 }
  0xe9   :  { %v600_v32 = vadd.f32 %v599_v60, %v546_v16 }
  0xea   :  { %1111 = vmatpush.msra.mxu1 %v1910_v56 }
  0xec   :  { %1113 = vmatpush.msra.mxu1 %v1928_v15 }
  0xee   :  { %1115 = vmatpush.msra.mxu1 %v1944_v34 }
  0xef   :  { %v638_v6 = vpop.f32.mrf.mxu1 }
  0xf0   :  { %v639_v21 = vadd.f32 %v638_v6, %v600_v32  ;;  %1117 = vmatpush.msra.mxu1 %v1959_v57 }
  0xf2   :  { %v707_v46 = vpop.f32.mrf.mxu2 }
  0xf3   :  { %v708_v59 = vadd.f32 %v707_v46, %v639_v21 }
  0xf4   :  { %v744_v22 = vpop.f32.mrf.mxu3 }
  0xf5   :  { %v745_v17 = vadd.f32 %v744_v22, %v708_v59 }
  0xf7   :  { %v1142_v53 = vmul.f32 -1.442695, %v745_v17 }
  0xf9   :  { %1147 = vpow2.f32 %v1142_v53 }
  0xff   :  { %v1148_v61 = vpop.eup %1147 }
 0x100   :  { %v750_v25 = vadd.f32 1.0, %v1148_v61 }
 0x102   :  { %1149 = vrcp.f32 %v750_v25  ;;  %v762_v52 = vand.u32 2147483648, %v750_v25  ;;  %v760_v11 = vand.u32 2147483647, %v750_v25  ;;  %vm756_vm1 = vweird.f32 %v750_v25 }
 0x104   :  { %v763_v55 = vor.u32 1.1754944e-38, %v762_v52  ;;  %vm761_vm3 = vcmp.eq.f32.partialorder %v760_v11, 8.507059e+37 }
 0x108   :  { %v1150_v1 = vpop.eup %1149 }
 0x109   :  { %v752_v28 = vmul.f32 %v1150_v1, %v750_v25  ;;  %vm757_vm0 = vweird.f32 %v1150_v1 }
 0x10a   :  { %vm758_vm2 = vmor %vm756_vm1, %vm757_vm0 }
 0x10b   :  { %v753_v4 = vsub.f32 1.0, %v752_v28 }
 0x10d   :  { %v754_v49 = vmul.f32 %v1150_v1, %v753_v4 }
 0x10f   :  { %v755_v41 = vadd.f32 %v1150_v1, %v754_v49 }
 0x111   :  { %v759_v0 = vsel %vm758_vm2, %v1150_v1, %v755_v41 }
 0x112   :  { %v764_v43 = vsel %vm761_vm3, %v763_v55, %v759_v0 }
 0x113   :  { %v814_v33 = vand.u32 4294901760, %v764_v43 }
 0x115   :  { %920 = vmatmul.f32.vlgmr.msrb.gmra.mxu1 %v814_v33  ;;  %v815_v31 = vsub.f32 %v764_v43, %v814_v33 }
 0x117   :  { %974 = vmatmul.f32.vlgmr.msrb.gmra.mxu2 %v815_v31  ;;  %v816_v24 = vand.u32 4294901760, %v815_v31 }
 0x119   :  { %1013 = vmatmul.f32.vlgmr.msrb.gmra.mxu3 %v816_v24  ;;  %v817_v27 = vsub.f32 %v815_v31, %v816_v24 }
 0x11b   :  { %v818_v30 = vand.u32 4294901760, %v817_v27 }
 0x11d   :  { %819 = vmatmul.f32.vlgmr.msrb.gmra.mxu0 %v818_v30  ;;  %1119 = vmatmul.f32.vlgmr.msra.gmra.mxu1 %v814_v33 }
 0x125   :  { %1082 = vmatmul.f32.vlgmr.msra.gmra.mxu0 %v814_v33 }
 0x192   :  { %v921_v56 = vpop.f32.mrf.mxu1 }
 0x19a   :  { %v820_v20 = vpop.f32.mrf.mxu0  ;;  %v975_v15 = vpop.f32.mrf.mxu2 }
 0x19b   :  { %v922_v14 = vadd.f32 %v921_v56, %v820_v20  ;;  %v1120_v10 = vpop.f32.mrf.mxu1 }
 0x19c   :  { %v1014_v9 = vpop.f32.mrf.mxu3 }
 0x19d   :  { %v976_v40 = vadd.f32 %v975_v15, %v922_v14 }
 0x19f   :  { %v1015_v19 = vadd.f32 %v1014_v9, %v976_v40 }
 0x1a2   :  { %v1083_v34 = vpop.f32.mrf.mxu0 }
 0x1a3   :  { %v1084_v47 = vadd.f32 %v1083_v34, %v1015_v19 }
 0x1a5   :  { %v1121_v26 = vadd.f32 %v1120_v10, %v1084_v47 }
 0x1a7   :  { %1124 = vst.msk [vmem:[#allocation5] sm:$0xff] %vm1123_vm4, %v1121_v26 }
 0x1a8   :  { %1135 = dma.vmem_to_hbm [thread:$0]  %s1131_s24, 128, %s1133_s27, [#allocation4]  }
 0x1a9   :  { %1201 = dma.done.wait [#allocation4], 128  }
 0x1aa   :  { %1202 = vsyncadd [#allocation4], 4294967168 }
 0x1ab   :  { %1140 = vsyncpa [#allocation3], 1 }
 0x1ac   :  { %1141 = vsyncpa [#allocation4], 1 }

</bundles_post_ra>
